<compile_context>
chip_gen: v6e
topology: v6e:2x2x1
jax: 0.10.0
libtpu: 0.0.40
codegen_flags: <defaults>
</compile_context>

<pallas_src>
import functools

import jax
import jax.numpy as jnp
from jax.experimental import pallas as pl
from jax.experimental.pallas import tpu as pltpu

IN_DIM = 4
HIDDEN = 128
OUT_DIM = 2
OUT_PAD = 8      # fc3 output rows padded to one f32 sublane tile
LANE = 128       # batch lives on the lane axis -> batch tiles are multiples of 128


def qnet_kernel(xT_ref, w1T_ref, w2T_ref, w3T_ref, b_ref, out_ref, *, compute_dtype):
    """One batch tile of the DQN MLP, feature-major (batch on lanes).

    xT_ref  : (4, TB)     f32            observations, transposed
    w1T_ref : (128, 4)    f32            fc1 weight^T (out, in), VPU path
    w2T_ref : (128, 128)  compute_dtype  fc2 weight^T
    w3T_ref : (8, 128)    compute_dtype  fc3 weight^T, zero-padded 2 -> 8 rows
    b_ref   : (128, 8)    f32            col0 = b1, col1 = b2, col2[:8] = b3 padded
    out_ref : (8, TB)     f32            rows >= 2 are zero; sliced away outside
    """
    xT = xT_ref[...]                      # (4, TB)   f32
    w1T = w1T_ref[...]                    # (128, 4)  f32
    b = b_ref[...]                        # (128, 8)  f32
    b1c = b[:, 0:1]                       # (128, 1)
    b2c = b[:, 1:2]                       # (128, 1)
    b3c = b[0:OUT_PAD, 2:3]               # (8, 1)

    # ---- fc1 + ReLU on the VPU --------------------------------------------
    # K=4 is a degenerate MXU contraction; 4 unrolled broadcast FMAs are
    # cheaper and leave the MXU free for fc2/fc3.  Kept in f32 (no bf16 VPU
    # on v5e).
    h1 = b1c + w1T[:, 0:1] * xT[0:1, :]
    for k in range(1, IN_DIM):
        h1 = h1 + w1T[:, k:k + 1] * xT[k:k + 1, :]
    h1 = jnp.maximum(h1, 0.0)             # (128, TB) f32

    # ---- fc2 + ReLU on the MXU (bf16 inputs optional, f32 accumulate) ------
    h2 = jnp.dot(w2T_ref[...], h1.astype(compute_dtype),
                 preferred_element_type=jnp.float32) + b2c
    h2 = jnp.maximum(h2, 0.0)             # (128, TB) f32

    # ---- fc3 on the MXU; narrow (8, TB) lane-dense store --------------------
    out = jnp.dot(w3T_ref[...], h2.astype(compute_dtype),
                  preferred_element_type=jnp.float32) + b3c
    out_ref[...] = out                    # (8, TB) f32


def prepare_params(params, compute_dtype=jnp.float32):
    """One-time packing (do at init / target-network sync, NOT per forward call).

    bf16 compute_dtype is valid on v5e/v6e/v7x: only the MXU sees bf16; fc1
    stays f32 on the VPU and all accumulation / bias / ReLU is f32.
    """
    w1, b1, w2, b2, w3, b3 = params
    w1T = jnp.asarray(w1, jnp.float32).T                            # (128, 4)
    w2T = jnp.asarray(w2, jnp.float32).T.astype(compute_dtype)      # (128, 128)
    w3T = (jnp.zeros((OUT_PAD, HIDDEN), jnp.float32)
           .at[:OUT_DIM, :].set(jnp.asarray(w3, jnp.float32).T)
           .astype(compute_dtype))                                  # (8, 128)
    biases = (jnp.zeros((HIDDEN, OUT_PAD), jnp.float32)
              .at[:, 0].set(b1)
              .at[:, 1].set(b2)
              .at[:OUT_DIM, 2].set(b3))                             # (128, 8)
    return (w1T, w2T, w3T, biases)


def qnet_forward(x, packed_params, *, tile_b=1024):
    """Pallas forward pass: x (B, 4) f32 -> Q-values (B, 2) f32."""
    w1T, w2T, w3T, biases = packed_params
    compute_dtype = w2T.dtype
    B = x.shape[0]

    # Batch is on the lane axis: round up to a multiple of 128.
    b_min = max(LANE, ((B + LANE - 1) // LANE) * LANE)
    tb = min(tile_b, b_min)
    n_lane_tiles = b_min // LANE
    if n_lane_tiles >= 2:
        # Guarantee >= 2 grid steps so both of v7x's TensorCores get work.
        tb = min(tb, LANE * ((n_lane_tiles + 1) // 2))
    b_pad = ((b_min + tb - 1) // tb) * tb
    grid = (b_pad // tb,)

    xT = jnp.pad(x.astype(jnp.float32), ((0, b_pad - B), (0, 0))).T   # (4, b_pad)

    itemsize = jnp.dtype(compute_dtype).itemsize
    flops = 2 * b_pad * (IN_DIM * HIDDEN + HIDDEN * HIDDEN + HIDDEN * OUT_PAD)
    bytes_accessed = (IN_DIM * b_pad * 4            # xT
                      + OUT_PAD * b_pad * 4         # out
                      + HIDDEN * IN_DIM * 4         # w1T
                      + HIDDEN * HIDDEN * itemsize  # w2T
                      + OUT_PAD * HIDDEN * itemsize # w3T
                      + HIDDEN * OUT_PAD * 4)       # biases
    cost = pl.CostEstimate(flops=flops, transcendentals=0,
                           bytes_accessed=bytes_accessed)

    out_padded = pl.pallas_call(
        functools.partial(qnet_kernel, compute_dtype=compute_dtype),
        out_shape=jax.ShapeDtypeStruct((OUT_PAD, b_pad), jnp.float32),
        grid_spec=pltpu.PrefetchScalarGridSpec(
            num_scalar_prefetch=0,
            grid=grid,
            in_specs=[
                pl.BlockSpec((IN_DIM, tb), lambda i: (0, i)),       # xT tile
                pl.BlockSpec((HIDDEN, IN_DIM), lambda i: (0, 0)),   # w1T (resident)
                pl.BlockSpec((HIDDEN, HIDDEN), lambda i: (0, 0)),   # w2T (resident)
                pl.BlockSpec((OUT_PAD, HIDDEN), lambda i: (0, 0)),  # w3T (resident)
                pl.BlockSpec((HIDDEN, OUT_PAD), lambda i: (0, 0)),  # packed biases
            ],
            out_specs=pl.BlockSpec((OUT_PAD, tb), lambda i: (0, i)),
        ),
        compiler_params=pltpu.CompilerParams(
            dimension_semantics=("parallel",)),
        cost_estimate=cost,
    )(xT, w1T, w2T, w3T, biases)

    # Contiguous (2, B) slice of the narrow output, then transpose to (B, 2).
    return out_padded[:OUT_DIM, :B].T


def init_params(key):
    """Deterministic init mimicking nn.Linear's U(-1/sqrt(fan_in), 1/sqrt(fan_in))."""
    def linear(k, fan_in, fan_out):
        kw, kb = jax.random.split(k)
        bound = 1.0 / jnp.sqrt(fan_in)
        w = jax.random.uniform(kw, (fan_in, fan_out), jnp.float32, -bound, bound)
        b = jax.random.uniform(kb, (fan_out,), jnp.float32, -bound, bound)
        return w, b

    k1, k2, k3 = jax.random.split(key, 3)
    w1, b1 = linear(k1, IN_DIM, HIDDEN)
    w2, b2 = linear(k2, HIDDEN, HIDDEN)
    w3, b3 = linear(k3, HIDDEN, OUT_DIM)
    return (w1, b1, w2, b2, w3, b3)


def qnet_ref(x, params):
    """Pure-JAX reference for correctness checking."""
    w1, b1, w2, b2, w3, b3 = params
    h1 = jnp.maximum(x @ w1 + b1, 0.0)
    h2 = jnp.maximum(h1 @ w2 + b2, 0.0)
    return h2 @ w3 + b3


# TODO(synk): sample_action's host-side epsilon-greedy (random.random / argmax
# .item()) is Python control flow, not part of the forward pass kernel.

if __name__ == "__main__":
    key = jax.random.PRNGKey(0)
    kp, kx1, kx2 = jax.random.split(key, 3)
    params = init_params(kp)

    packed_f32 = prepare_params(params)                     # exact f32 path
    packed_bf16 = prepare_params(params, jnp.bfloat16)      # bf16 MXU path (all gens)

    # Small CartPole-style batch (obs dim = 4), single grid step.
    x_small = jax.random.normal(kx1, (8, IN_DIM), jnp.float32)
    out = jax.block_until_ready(qnet_forward(x_small, packed_f32))
    ref = qnet_ref(x_small, params)
    assert out.shape == (8, OUT_DIM)
    assert jnp.allclose(out, ref, atol=1e-4, rtol=1e-4), "f32 mismatch vs reference"

    # Replay-style batch exercising the multi-step "parallel" grid and the
    # batch-padding path (300 is not a multiple of the 128-lane tile; grid=2).
    x_big = jax.random.normal(kx2, (300, IN_DIM), jnp.float32)
    out_big = jax.block_until_ready(qnet_forward(x_big, packed_f32, tile_b=256))
    ref_big = qnet_ref(x_big, params)
    assert out_big.shape == (300, OUT_DIM)
    assert jnp.allclose(out_big, ref_big, atol=1e-4, rtol=1e-4), "tiled f32 mismatch"

    # bf16 MXU weights/activations for fc2/fc3 (f32 accumulate), loose tolerance.
    out_bf16 = jax.block_until_ready(qnet_forward(x_big, packed_bf16, tile_b=256))
    assert jnp.allclose(out_bf16, ref_big, atol=5e-2, rtol=5e-2), "bf16 mismatch"

    print("KERNEL_OK")
</pallas_src>

<mosaic_0001>
module attributes {stable_mosaic.version = 11 : i64} {
  func.func @qnet_kernel(%arg0: i32, %arg1: memref<4x128xf32, #tpu.memory_space<vmem>>, %arg2: memref<128x4xf32, #tpu.memory_space<vmem>>, %arg3: memref<128x128xf32, #tpu.memory_space<vmem>>, %arg4: memref<8x128xf32, #tpu.memory_space<vmem>>, %arg5: memref<128x8xf32, #tpu.memory_space<vmem>>, %arg6: memref<8x128xf32, #tpu.memory_space<vmem>>) attributes {dimension_semantics = [#tpu.dimension_semantics<parallel>], iteration_bounds = array<i64: 1>, scalar_prefetch = 0 : i64, scratch_operands = 0 : i64, tpu.core_type = #tpu.core_type<tc>, window_params = [{transform_indices = @transform_0, window_bounds = array<i64: 4, 128>}, {pipeline_mode = #tpu.pipeline_mode<synchronous>, transform_indices = @transform_1, window_bounds = array<i64: 128, 4>}, {pipeline_mode = #tpu.pipeline_mode<synchronous>, transform_indices = @transform_2, window_bounds = array<i64: 128, 128>}, {pipeline_mode = #tpu.pipeline_mode<synchronous>, transform_indices = @transform_3, window_bounds = array<i64: 8, 128>}, {pipeline_mode = #tpu.pipeline_mode<synchronous>, transform_indices = @transform_4, window_bounds = array<i64: 128, 8>}, {transform_indices = @transform_5, window_bounds = array<i64: 8, 128>}]} {
    %c0 = arith.constant 0 : index
    %c0_0 = arith.constant 0 : index
    %0 = vector.load %arg1[%c0, %c0_0] : memref<4x128xf32, #tpu.memory_space<vmem>>, vector<4x128xf32>
    %c0_1 = arith.constant 0 : index
    %c0_2 = arith.constant 0 : index
    %1 = vector.load %arg2[%c0_1, %c0_2] : memref<128x4xf32, #tpu.memory_space<vmem>>, vector<128x4xf32>
    %c0_3 = arith.constant 0 : index
    %c0_4 = arith.constant 0 : index
    %2 = vector.load %arg5[%c0_3, %c0_4] : memref<128x8xf32, #tpu.memory_space<vmem>>, vector<128x8xf32>
    %3 = vector.extract_strided_slice %2 {offsets = [0, 0], sizes = [128, 1], strides = [1, 1]} : vector<128x8xf32> to vector<128x1xf32>
    %4 = vector.extract_strided_slice %2 {offsets = [0, 1], sizes = [128, 1], strides = [1, 1]} : vector<128x8xf32> to vector<128x1xf32>
    %5 = vector.extract_strided_slice %2 {offsets = [0, 2], sizes = [8, 1], strides = [1, 1]} : vector<128x8xf32> to vector<8x1xf32>
    %6 = vector.extract_strided_slice %1 {offsets = [0, 0], sizes = [128, 1], strides = [1, 1]} : vector<128x4xf32> to vector<128x1xf32>
    %7 = vector.extract_strided_slice %0 {offsets = [0, 0], sizes = [1, 128], strides = [1, 1]} : vector<4x128xf32> to vector<1x128xf32>
    %8 = vector.broadcast %6 : vector<128x1xf32> to vector<128x128xf32>
    %9 = vector.broadcast %7 : vector<1x128xf32> to vector<128x128xf32>
    %10 = arith.mulf %8, %9 : vector<128x128xf32>
    %11 = vector.broadcast %3 : vector<128x1xf32> to vector<128x128xf32>
    %12 = arith.addf %11, %10 : vector<128x128xf32>
    %13 = vector.extract_strided_slice %1 {offsets = [0, 1], sizes = [128, 1], strides = [1, 1]} : vector<128x4xf32> to vector<128x1xf32>
    %14 = vector.extract_strided_slice %0 {offsets = [1, 0], sizes = [1, 128], strides = [1, 1]} : vector<4x128xf32> to vector<1x128xf32>
    %15 = vector.broadcast %13 : vector<128x1xf32> to vector<128x128xf32>
    %16 = vector.broadcast %14 : vector<1x128xf32> to vector<128x128xf32>
    %17 = arith.mulf %15, %16 : vector<128x128xf32>
    %18 = arith.addf %12, %17 : vector<128x128xf32>
    %19 = vector.extract_strided_slice %1 {offsets = [0, 2], sizes = [128, 1], strides = [1, 1]} : vector<128x4xf32> to vector<128x1xf32>
    %20 = vector.extract_strided_slice %0 {offsets = [2, 0], sizes = [1, 128], strides = [1, 1]} : vector<4x128xf32> to vector<1x128xf32>
    %21 = vector.broadcast %19 : vector<128x1xf32> to vector<128x128xf32>
    %22 = vector.broadcast %20 : vector<1x128xf32> to vector<128x128xf32>
    %23 = arith.mulf %21, %22 : vector<128x128xf32>
    %24 = arith.addf %18, %23 : vector<128x128xf32>
    %25 = vector.extract_strided_slice %1 {offsets = [0, 3], sizes = [128, 1], strides = [1, 1]} : vector<128x4xf32> to vector<128x1xf32>
    %26 = vector.extract_strided_slice %0 {offsets = [3, 0], sizes = [1, 128], strides = [1, 1]} : vector<4x128xf32> to vector<1x128xf32>
    %27 = vector.broadcast %25 : vector<128x1xf32> to vector<128x128xf32>
    %28 = vector.broadcast %26 : vector<1x128xf32> to vector<128x128xf32>
    %29 = arith.mulf %27, %28 : vector<128x128xf32>
    %30 = arith.addf %24, %29 : vector<128x128xf32>
    %cst = arith.constant 0.000000e+00 : f32
    %31 = vector.broadcast %cst : f32 to vector<128x128xf32>
    %32 = arith.maximumf %30, %31 : vector<128x128xf32>
    %c0_5 = arith.constant 0 : index
    %c0_6 = arith.constant 0 : index
    %33 = vector.load %arg3[%c0_5, %c0_6] : memref<128x128xf32, #tpu.memory_space<vmem>>, vector<128x128xf32>
    %cst_7 = arith.constant dense<0.000000e+00> : vector<128x128xf32>
    %34 = tpu.matmul %33, %32, %cst_7 {dimension_numbers = #tpu.dot_dimension_numbers<[1], [0], [0], [1], [0, 0, 1, 1], [], []>} : vector<128x128xf32>, vector<128x128xf32>, vector<128x128xf32> -> vector<128x128xf32>
    %35 = vector.broadcast %4 : vector<128x1xf32> to vector<128x128xf32>
    %36 = arith.addf %34, %35 : vector<128x128xf32>
    %cst_8 = arith.constant 0.000000e+00 : f32
    %37 = vector.broadcast %cst_8 : f32 to vector<128x128xf32>
    %38 = arith.maximumf %36, %37 : vector<128x128xf32>
    %c0_9 = arith.constant 0 : index
    %c0_10 = arith.constant 0 : index
    %39 = vector.load %arg4[%c0_9, %c0_10] : memref<8x128xf32, #tpu.memory_space<vmem>>, vector<8x128xf32>
    %cst_11 = arith.constant dense<0.000000e+00> : vector<8x128xf32>
    %40 = tpu.matmul %39, %38, %cst_11 {dimension_numbers = #tpu.dot_dimension_numbers<[1], [0], [0], [1], [0, 0, 1, 1], [], []>} : vector<8x128xf32>, vector<128x128xf32>, vector<8x128xf32> -> vector<8x128xf32>
    %41 = vector.broadcast %5 : vector<8x1xf32> to vector<8x128xf32>
    %42 = arith.addf %40, %41 : vector<8x128xf32>
    %c0_12 = arith.constant 0 : index
    %c0_13 = arith.constant 0 : index
    %43 = vector.load %arg6[%c0_12, %c0_13] : memref<8x128xf32, #tpu.memory_space<vmem>>, vector<8x128xf32>
    tpu.vector_store %arg6[%c0_12, %c0_13], %42 {strides = array<i32>} : memref<8x128xf32, #tpu.memory_space<vmem>>, vector<8x128xf32>,
    return
  }
  func.func @transform_0(%arg0: i32) -> (i32, i32) {
    %c0_i32 = arith.constant 0 : i32
    %c0_i32_0 = arith.constant 0 : i32
    return %c0_i32, %arg0 : i32, i32
  }
  func.func @transform_1(%arg0: i32) -> (i32, i32) {
    %c0_i32 = arith.constant 0 : i32
    %c0_i32_0 = arith.constant 0 : i32
    %c0_i32_1 = arith.constant 0 : i32
    return %c0_i32, %c0_i32_0 : i32, i32
  }
  func.func @transform_2(%arg0: i32) -> (i32, i32) {
    %c0_i32 = arith.constant 0 : i32
    %c0_i32_0 = arith.constant 0 : i32
    %c0_i32_1 = arith.constant 0 : i32
    return %c0_i32, %c0_i32_0 : i32, i32
  }
  func.func @transform_3(%arg0: i32) -> (i32, i32) {
    %c0_i32 = arith.constant 0 : i32
    %c0_i32_0 = arith.constant 0 : i32
    %c0_i32_1 = arith.constant 0 : i32
    return %c0_i32, %c0_i32_0 : i32, i32
  }
  func.func @transform_4(%arg0: i32) -> (i32, i32) {
    %c0_i32 = arith.constant 0 : i32
    %c0_i32_0 = arith.constant 0 : i32
    %c0_i32_1 = arith.constant 0 : i32
    return %c0_i32, %c0_i32_0 : i32, i32
  }
  func.func @transform_5(%arg0: i32) -> (i32, i32) {
    %c0_i32 = arith.constant 0 : i32
    %c0_i32_0 = arith.constant 0 : i32
    return %c0_i32, %arg0 : i32, i32
  }
}

</mosaic_0001>

<bundles_post_ra>
// kernel: tpu_custom_call.1
= control target key start
LH: loop header
LB: loop body
LE: loop exit
PB: predicated region body
PF: predicated region fallthrough
CT: control target
= control target key end

     0   :  { %v1122_v2 = vmov 3   ;;  %v1123_v3 = vmov 0   ;;  %v1124_v5 = vmov 1   ;;  %s1628_s0 = inlined_call_operand.vmem [shape: f32[4,128], index: 0, kind: input, shape index: {}]   ;;  %s1629_s1 = inlined_call_operand.vmem [shape: f32[128,4], index: 1, kind: input, shape index: {}]   ;;  %s1630_s2 = inlined_call_operand.vmem [shape: f32[128,128], index: 2, kind: input, shape index: {}]   ;;  %s1631_s3 = inlined_call_operand.vmem [shape: f32[8,128], index: 3, kind: input, shape index: {}]   ;;  %s1632_s4 = inlined_call_operand.vmem [shape: f32[128,8], index: 4, kind: input, shape index: {}]   ;;  %s1633_s5 = inlined_call_operand.hbm [shape: f32[8,128], index: 5, kind: output, shape index: {}]  }
   0x1   :  { %v1162_v0 = vld [vmem:[%s1632_s4 + $0x78] sm:$0xff]  ;;  %1051 = vset.pattern.permute.xlu0 %v1122_v2  ;;  %1044 = vset.pattern.permute.xlu1 %v1123_v3  ;;  %v1173_v4 = vld [vmem:[%s1629_s1 + $0x60] sm:$0xff]  ;;  %v1180_v6 = vld [vmem:[%s1629_s1 + $0x48] sm:$0xff] }
   0x2   :  { %v37_v1 = vld [vmem:[%s1629_s1 + $0x78] sm:$0xff]  ;;  %231 = vperm.xlu1 %1044, %v1162_v0  }
   0x3   :  { %511 = vperm.xlu0 %1051, %v37_v1  }
   0x6   :  { %1045 = vset.pattern.permute.xlu1 %v1124_v5 }
   0x7   :  { %499 = vperm.xlu0 %1051, %v1173_v4   ;;  %311 = vperm.xlu1 %1045, %v37_v1  }
   0x8   :  { %10 = vsyncpa [#allocation3], 0  ;;  %v1185_v7 = vld [vmem:[%s1632_s4 + $0x70] sm:$0xff]  ;;  %v1125_v9 = vmov 2   ;;  %v35_v11 = vld [vmem:[%s1629_s1 + $0x68] sm:$0xff]  ;;  %v134_v44 = vlaneseq  ;;  %vm1127_vm0 = vmmov 0  }
   0x9   :  { %v1192_v8 = vld [vmem:[%s1629_s1 + $0x30] sm:$0xff]  ;;  %v1214_v12 = vld [vmem:[%s1629_s1 + $0x18] sm:$0xff]  ;;  %v1224_v14 = vld [vmem:[%s1632_s4 + $0x60] sm:$0xff]  ;;  %s1128_s11 = smov [#allocation2]  }
   0xa   :  { %v36_v10 = vld [vmem:[%s1629_s1 + $0x70] sm:$0xff]  ;;  %v33_v13 = vld [vmem:[%s1629_s1 + $0x58] sm:$0xff]  ;;  %v1232_v15 = vld [vmem:[%s1632_s4 + $0x68] sm:$0xff]  ;;  %v135_v47 = vshrl.u32 %v134_v44, 7  ;;  %s889_s12 = sshll.u32 %s1128_s11, 4  ;;  %s890_s12 = int_to_ptr.vmem [resolvable:$true] %s889_s12 }
   0xb   :  { %487 = vperm.xlu0 %1051, %v1180_v6   ;;  %1046 = vset.pattern.permute.xlu1 %v1123_v3  ;;  %v49_v16 = vld [vmem:[%s1632_s4 + $0x58] sm:$0xff]  ;;  %v32_v17 = vld [vmem:[%s1629_s1 + $0x50] sm:$0xff]  ;;  %v1263_v21 = vld [vmem:[%s1629_s1 + $0x20] sm:$0xff]  ;;  %s1100_s13 = scalar_lea.vmem %s890_s12, 128  ;;  %p1105_p1 = scmp.lt.s32.totalorder %s890_s12, %s890_s12 }
   0xc   :  { %226 = vperm.xlu1 %1046, %v1185_v7   ;;  %v1246_v18 = vld [vmem:[%s1632_s4 + $0x50] sm:$0xff]  ;;  %v1253_v19 = vld [vmem:[%s1629_s1 + $0x38] sm:$0xff]  ;;  %v1271_v22 = vld [vmem:[%s1632_s4 + $0x20] sm:$0xff]  ;;  %v316_v50 = vsub.s32 1, %v135_v47  ;;  %v136_v51 = vsub.s32 0, %v135_v47  ;;  %v516_v53 = vsub.s32 3, %v135_v47  ;;  %p1101_p0 = scmp.ne.s32.totalorder %s890_s12, %s1100_s13  ;;  %p1106_p2 = scmp.lt.s32.totalorder %s1100_s13, %s1100_s13 }
   0xd   :  { %v45_v20 = vld [vmem:[%s1632_s4 + $0x38] sm:$0xff]  ;;  %v1278_v23 = vld [vmem:[%s1629_s1 + $0x8] sm:$0xff]  ;;  %v1288_v25 = vld [vmem:[%s1629_s1 + $0x40] sm:$0xff]  ;;  %v416_v55 = vsub.s32 2, %v135_v47 }
   0xe   :  { %v39_v24 = vld [vmem:[%s1632_s4 + $0x8] sm:$0xff]  ;;  %v1305_v27 = vld [vmem:[%s1632_s4 + $0x40] sm:$0xff]  ;;  %v1341_v36 = vld [vmem:[%s1632_s4 + $0x30] sm:$0xff]  ;;  %p1107_p3 = por %p1106_p2, %p1105_p1 }
   0xf   :  { %475 = vperm.xlu0 %1051, %v1192_v8   ;;  %v47_v26 = vld [vmem:[%s1632_s4 + $0x48] sm:$0xff]  ;;  %v1348_v38 = vld [vmem:[%s1632_s4 + $0x18] sm:$0xff]  ;;  %v1361_v43 = vld [vmem:[%s1632_s4] sm:$0xff] }
  0x10   :  { %1047 = vset.pattern.permute.xlu1 %v1125_v9  ;;  %v1329_v32 = vld [vmem:[%s1629_s1 + $0x28] sm:$0xff]  ;;  %v21_v54 = vld [vmem:[%s1628_s0] sm:$0xf]  ;;  %p1108_p4 = pnand %p1107_p3, %p1101_p0 }
  0x11   :  { %411 = vperm.xlu1 %1047, %v37_v1   ;;  %v43_v34 = vld [vmem:[%s1632_s4 + $0x28] sm:$0xff]  ;;  %v1383_v57 = vrot.slane %v21_v54, %v316_v50  ;;  %v1385_v58 = vrot.slane %v21_v54, %v136_v51  ;;  %v1387_v59 = vrot.slane %v21_v54, %v516_v53  ;;  %v1390_v61 = vrot.slane %v21_v54, %v416_v55 }
  0x13   :  { %1079 = vset.pattern.permute.xlu0 %v1124_v5 }
  0x14   :  { %307 = vperm.xlu0 %1079, %v36_v10  }
  0x15   :  { %1048 = vset.pattern.permute.xlu1 %v1123_v3 }
  0x16   :  { %116 = vperm.xlu1 %1048, %v1173_v4  }
  0x18   :  { %299 = vperm.xlu0 %1079, %v1173_v4  }
  0x1a   :  { %1049 = vset.pattern.permute.xlu1 %v1124_v5 }
  0x1b   :  { %303 = vperm.xlu1 %1049, %v35_v11  }
  0x1c   :  { %287 = vperm.xlu0 %1079, %v1180_v6  }
  0x1f   :  { %1050 = vset.pattern.permute.xlu1 %v1125_v9 }
  0x20   :  { %275 = vperm.xlu0 %1079, %v1192_v8   ;;  %407 = vperm.xlu1 %1050, %v36_v10  }
  0x24   :  { %263 = vperm.xlu0 %1079, %v1214_v12   ;;  %1052 = vset.pattern.permute.xlu1 %v1123_v3 }
  0x25   :  { %111 = vperm.xlu1 %1052, %v33_v13  }
  0x28   :  { %1081 = vset.pattern.permute.xlu0 %v1123_v3 }
  0x29   :  { %131 = vperm.xlu0 %1081, %v37_v1   ;;  %216 = vperm.xlu1 %1052, %v1224_v14  }
  0x2d   :  { %126 = vperm.xlu0 %1081, %v36_v10   ;;  %1053 = vset.pattern.permute.xlu1 %v1125_v9 }
  0x2e   :  { %403 = vperm.xlu1 %1053, %v35_v11  }
  0x31   :  { %121 = vperm.xlu0 %1081, %v35_v11  }
  0x32   :  { %1054 = vset.pattern.permute.xlu1 %v1122_v2 }
  0x33   :  { %507 = vperm.xlu1 %1054, %v36_v10  }
  0x35   :  { %221 = vperm.xlu0 %1081, %v1232_v15  }
  0x37   :  { %1055 = vset.pattern.permute.xlu1 %v1123_v3 }
  0x38   :  { %211 = vperm.xlu1 %1055, %v49_v16  }
  0x39   :  { %106 = vperm.xlu0 %1081, %v32_v17  }
  0x3c   :  { %1056 = vset.pattern.permute.xlu1 %v1124_v5 }
  0x3d   :  { %206 = vperm.xlu0 %1081, %v1246_v18   ;;  %295 = vperm.xlu1 %1056, %v33_v13  }
  0x41   :  { %91 = vperm.xlu0 %1081, %v1253_v19   ;;  %1057 = vset.pattern.permute.xlu1 %v1122_v2 }
  0x42   :  { %503 = vperm.xlu1 %1057, %v35_v11  }
  0x45   :  { %191 = vperm.xlu0 %1081, %v45_v20  }
  0x46   :  { %1058 = vset.pattern.permute.xlu1 %v1123_v3 }
  0x47   :  { %101 = vperm.xlu1 %1058, %v1180_v6  }
  0x49   :  { %76 = vperm.xlu0 %1081, %v1263_v21  }
  0x4b   :  { %1059 = vset.pattern.permute.xlu1 %v1124_v5 }
  0x4c   :  { %291 = vperm.xlu1 %1059, %v32_v17  }
  0x4d   :  { %176 = vperm.xlu0 %1081, %v1271_v22  }
  0x50   :  { %1060 = vset.pattern.permute.xlu1 %v1125_v9 }
  0x51   :  { %61 = vperm.xlu0 %1081, %v1278_v23   ;;  %395 = vperm.xlu1 %1060, %v33_v13  }
  0x55   :  { %161 = vperm.xlu0 %1081, %v39_v24   ;;  %1061 = vset.pattern.permute.xlu1 %v1123_v3 }
  0x56   :  { %96 = vperm.xlu1 %1061, %v1288_v25  }
  0x59   :  { %1088 = vset.pattern.permute.xlu0 %v1125_v9 }
  0x5a   :  { %399 = vperm.xlu0 %1088, %v1173_v4   ;;  %201 = vperm.xlu1 %1061, %v47_v26  }
  0x5e   :  { %387 = vperm.xlu0 %1088, %v1180_v6   ;;  %1062 = vset.pattern.permute.xlu1 %v1125_v9 }
  0x5f   :  { %391 = vperm.xlu1 %1062, %v32_v17  }
  0x62   :  { %375 = vperm.xlu0 %1088, %v1192_v8  }
  0x63   :  { %1063 = vset.pattern.permute.xlu1 %v1122_v2 }
  0x64   :  { %495 = vperm.xlu1 %1063, %v33_v13  }
  0x66   :  { %363 = vperm.xlu0 %1088, %v1214_v12  }
  0x68   :  { %1064 = vset.pattern.permute.xlu1 %v1123_v3 }
  0x69   :  { %196 = vperm.xlu1 %1064, %v1305_v27  }
  0x6a   :  { %355 = vperm.xlu0 %1088, %v1278_v23  }
  0x6d   :  { %1065 = vset.pattern.permute.xlu1 %v1124_v5 }
  0x6e   :  { %1093 = vset.pattern.permute.xlu0 %v1122_v2  ;;  %283 = vperm.xlu1 %1065, %v1288_v25  }
  0x6f   :  { %463 = vperm.xlu0 %1093, %v1214_v12  }
  0x72   :  { %1066 = vset.pattern.permute.xlu1 %v1122_v2 }
  0x73   :  { %455 = vperm.xlu0 %1093, %v1278_v23   ;;  %491 = vperm.xlu1 %1066, %v32_v17  }
  0x77   :  { %1098 = vset.pattern.permute.xlu0 %v1124_v5  ;;  %1067 = vset.pattern.permute.xlu1 %v1123_v3 }
  0x78   :  { %639 = vperm.xlu0 %1098, %v1185_v7   ;;  %86 = vperm.xlu1 %1067, %v1192_v8  }
  0x7c   :  { %627 = vperm.xlu0 %1098, %v49_v16   ;;  %1068 = vset.pattern.permute.xlu1 %v1124_v5 }
  0x7d   :  { %v232_v28 = vpop.permute.xlu1 %231  ;;  %279 = vperm.xlu1 %1068, %v1253_v19  }
  0x7e   :  { %v512_v29 = vpop.permute.xlu0 %511 }
  0x7f   :  { %v533_v6 = vmul.f32 %v1387_v59, %v512_v29 }
  0x80   :  { %619 = vperm.xlu0 %1098, %v47_v26  }
  0x81   :  { %1069 = vset.pattern.permute.xlu1 %v1125_v9 }
  0x82   :  { %v1323_v30 = vpop.permute.xlu0 %499  ;;  %v312_v31 = vpop.permute.xlu1 %311  ;;  %383 = vperm.xlu1 %1069, %v1288_v25  }
  0x83   :  { %v333_v1 = vmul.f32 %v1383_v57, %v312_v31 }
  0x84   :  { %611 = vperm.xlu0 %1098, %v45_v20  }
  0x86   :  { %v1331_v33 = vpop.permute.xlu0 %487  ;;  %1070 = vset.pattern.permute.xlu1 %v1123_v3 }
  0x87   :  { %v227_v35 = vpop.permute.xlu1 %226  ;;  %81 = vperm.xlu1 %1070, %v1329_v32  }
  0x88   :  { %603 = vperm.xlu0 %1098, %v43_v34  }
  0x8a   :  { %v1343_v37 = vpop.permute.xlu0 %475 }
  0x8b   :  { %186 = vperm.xlu1 %1070, %v1341_v36  }
  0x8c   :  { %595 = vperm.xlu0 %1098, %v1348_v38   ;;  %v412_v39 = vpop.permute.xlu1 %411 }
  0x8d   :  { %v433_v8 = vmul.f32 %v1390_v61, %v412_v39 }
  0x8f   :  { %v308_v40 = vpop.permute.xlu0 %307  ;;  %1071 = vset.pattern.permute.xlu1 %v1125_v9 }
  0x90   :  { %587 = vperm.xlu0 %1098, %v39_v24   ;;  %379 = vperm.xlu1 %1071, %v1253_v19   ;;  %v332_v10 = vmul.f32 %v1383_v57, %v308_v40 }
  0x91   :  { %v1354_v41 = vpop.permute.xlu1 %116 }
  0x93   :  { %v1356_v42 = vpop.permute.xlu0 %299 }
  0x94   :  { %1099 = vset.pattern.permute.xlu0 %v1125_v9  ;;  %1072 = vset.pattern.permute.xlu1 %v1122_v2 }
  0x95   :  { %809 = vperm.xlu0 %1099, %v1361_v43   ;;  %483 = vperm.xlu1 %1072, %v1288_v25  }
  0x96   :  { %v1367_v45 = vpop.permute.xlu1 %303 }
  0x97   :  { %v1369_v46 = vpop.permute.xlu0 %287  ;;  %v331_v53 = vmul.f32 %v1383_v57, %v1367_v45 }
  0x99   :  { %1073 = vset.pattern.permute.xlu1 %v1123_v3 }
  0x9a   :  { %181 = vperm.xlu1 %1073, %v43_v34  }
  0x9b   :  { %v1372_v48 = vpop.permute.xlu0 %275  ;;  %v408_v49 = vpop.permute.xlu1 %407 }
  0x9c   :  { %v432_v24 = vmul.f32 %v1390_v61, %v408_v49  ;;  %v1417_v49 = vld [vmem:[%s1629_s1 + $0x10] sm:$0xff] }
  0x9e   :  { %1074 = vset.pattern.permute.xlu1 %v1124_v5 }
  0x9f   :  { %v1375_v52 = vpop.permute.xlu0 %263  ;;  %271 = vperm.xlu1 %1074, %v1329_v32  }
  0xa0   :  { %v1381_v56 = vpop.permute.xlu1 %111 }
  0xa3   :  { %1075 = vset.pattern.permute.xlu1 %v1122_v2 }
  0xa4   :  { %v132_v60 = vpop.permute.xlu0 %131  ;;  %v1393_v63 = vpop.permute.xlu1 %216  ;;  %479 = vperm.xlu1 %1075, %v1253_v19  }
  0xa5   :  { %v153_v62 = vmul.f32 %v1385_v58, %v132_v60 }
  0xa7   :  { %v249_v4 = vadd.f32 %v232_v28, %v153_v62 }
  0xa8   :  { %v127_v7 = vpop.permute.xlu0 %126  ;;  %1076 = vset.pattern.permute.xlu1 %v1123_v3 }
  0xa9   :  { %v349_v11 = vadd.f32 %v333_v1, %v249_v4  ;;  %v152_v13 = vmul.f32 %v1385_v58, %v127_v7  ;;  %v404_v16 = vpop.permute.xlu1 %403  ;;  %71 = vperm.xlu1 %1076, %v1214_v12  }
  0xaa   :  { %v431_v62 = vmul.f32 %v1390_v61, %v404_v16 }
  0xab   :  { %v248_v17 = vadd.f32 %v227_v35, %v152_v13  ;;  %v449_v19 = vadd.f32 %v433_v8, %v349_v11 }
  0xac   :  { %v122_v20 = vpop.permute.xlu0 %121 }
  0xad   :  { %v348_v25 = vadd.f32 %v332_v10, %v248_v17  ;;  %v549_v26 = vadd.f32 %v533_v6, %v449_v19  ;;  %1077 = vset.pattern.permute.xlu1 %v1124_v5  ;;  %v151_v12 = vmul.f32 %v1385_v58, %v122_v20 }
  0xae   :  { %v508_v28 = vpop.permute.xlu1 %507  ;;  %267 = vperm.xlu1 %1077, %v1263_v21  }
  0xaf   :  { %v448_v29 = vadd.f32 %v432_v24, %v348_v25  ;;  %v565_v31 = vmax.f32 %v549_v26, 0.0  ;;  %v532_v34 = vmul.f32 %v1387_v59, %v508_v28  ;;  %v1441_v24 = vld [vmem:[%s1632_s4 + $0x10] sm:$0xff] }
  0xb0   :  { %v222_v39 = vpop.permute.xlu0 %221 }
  0xb1   :  { %946 = vmatprep.subr.mxu0 %v565_v31  ;;  %v548_v40 = vadd.f32 %v532_v34, %v448_v29  ;;  %v247_v50 = vadd.f32 %v222_v39, %v151_v12  ;;  %v330_v34 = vmul.f32 %v1383_v57, %v1356_v42  ;;  %v327_v12 = vmul.f32 %v1383_v57, %v1369_v46  ;;  %v22_v46 = vld [vmem:[%s1629_s1] sm:$0xff] }
  0xb2   :  { %947 = vmatpush3.msra.mxu0 %v565_v31  ;;  %1078 = vset.pattern.permute.xlu1 %v1125_v9 }
  0xb3   :  { %v1409_v35 = vpop.permute.xlu1 %211  ;;  %371 = vperm.xlu1 %1078, %v1329_v32   ;;  %v564_v47 = vmax.f32 %v548_v40, 0.0  ;;  %v347_v55 = vadd.f32 %v331_v53, %v247_v50  ;;  %v530_v50 = vmul.f32 %v1387_v59, %v1323_v30 }
  0xb4   :  { %v1412_v44 = vpop.permute.xlu0 %106 }
  0xb5   :  { %948 = vmatprep.subr.mxu0 %v564_v47  ;;  %v447_v6 = vadd.f32 %v431_v62, %v347_v55 }
  0xb6   :  { %949 = vmatpush3.msra.mxu0 %v564_v47 }
  0xb7   :  { %1080 = vset.pattern.permute.xlu1 %v1123_v3 }
  0xb8   :  { %v1420_v51 = vpop.permute.xlu0 %206  ;;  %v296_v54 = vpop.permute.xlu1 %295  ;;  %66 = vperm.xlu1 %1080, %v1417_v49  }
  0xbc   :  { %v92_v60 = vpop.permute.xlu0 %91  ;;  %171 = vperm.xlu1 %1080, %v1348_v38  }
  0xbd   :  { %v145_v1 = vmul.f32 %v1385_v58, %v92_v60  ;;  %v504_v4 = vpop.permute.xlu1 %503 }
  0xbe   :  { %v531_v7 = vmul.f32 %v1387_v59, %v504_v4  ;;  %v527_v4 = vmul.f32 %v1387_v59, %v1331_v33 }
  0xc0   :  { %v192_v8 = vpop.permute.xlu0 %191  ;;  %v547_v10 = vadd.f32 %v531_v7, %v447_v6  ;;  %1082 = vset.pattern.permute.xlu1 %v1125_v9  ;;  %v149_v7 = vmul.f32 %v1385_v58, %v1381_v56 }
  0xc1   :  { %v1429_v11 = vadd.f32 %v192_v8, %v145_v1  ;;  %367 = vperm.xlu1 %1082, %v1263_v21  }
  0xc2   :  { %v563_v45 = vmax.f32 %v547_v10, 0.0  ;;  %v102_v13 = vpop.permute.xlu1 %101 }
  0xc3   :  { %v147_v47 = vmul.f32 %v1385_v58, %v102_v13  ;;  %v245_v13 = vadd.f32 %v1409_v35, %v149_v7  ;;  %v148_v35 = vmul.f32 %v1385_v58, %v1412_v44 }
  0xc4   :  { %v77_v17 = vpop.permute.xlu0 %76  ;;  %950 = vmatprep.subr.mxu0 %v563_v45 }
  0xc5   :  { %v142_v16 = vmul.f32 %v1385_v58, %v77_v17  ;;  %1083 = vset.pattern.permute.xlu1 %v1122_v2  ;;  %951 = vmatpush3.msra.mxu0 %v563_v45 }
  0xc6   :  { %471 = vperm.xlu1 %1083, %v1329_v32   ;;  %v150_v32 = vmul.f32 %v1385_v58, %v1354_v41 }
  0xc7   :  { %v292_v38 = vpop.permute.xlu1 %291 }
  0xc8   :  { %v177_v19 = vpop.permute.xlu0 %176  ;;  %v246_v39 = vadd.f32 %v1393_v63, %v150_v32 }
  0xc9   :  { %v1436_v20 = vadd.f32 %v177_v19, %v142_v16 }
  0xca   :  { %1084 = vset.pattern.permute.xlu1 %v1123_v3  ;;  %v346_v53 = vadd.f32 %v330_v34, %v246_v39 }
  0xcb   :  { %166 = vperm.xlu1 %1084, %v1441_v24  }
  0xcc   :  { %v62_v25 = vpop.permute.xlu0 %61  ;;  %v396_v26 = vpop.permute.xlu1 %395 }
  0xcd   :  { %v139_v28 = vmul.f32 %v1385_v58, %v62_v25  ;;  %v429_v17 = vmul.f32 %v1390_v61, %v396_v26  ;;  %v244_v26 = vadd.f32 %v1420_v51, %v148_v35 }
  0xcf   :  { %1085 = vset.pattern.permute.xlu1 %v1124_v5 }
  0xd0   :  { %v162_v29 = vpop.permute.xlu0 %161  ;;  %259 = vperm.xlu1 %1085, %v1417_v49  }
  0xd1   :  { %v1450_v31 = vadd.f32 %v162_v29, %v139_v28  ;;  %v1455_v40 = vpop.permute.xlu1 %96 }
  0xd4   :  { %1086 = vset.pattern.permute.xlu1 %v1122_v2 }
  0xd5   :  { %v400_v41 = vpop.permute.xlu0 %399  ;;  %v202_v60 = vpop.permute.xlu1 %201  ;;  %467 = vperm.xlu1 %1086, %v1263_v21   ;;  %v329_v21 = vmul.f32 %v1383_v57, %v296_v54 }
  0xd6   :  { %v430_v55 = vmul.f32 %v1390_v61, %v400_v41  ;;  %v243_v42 = vadd.f32 %v202_v60, %v147_v47 }
  0xd7   :  { %v345_v16 = vadd.f32 %v329_v21, %v245_v13 }
  0xd8   :  { %v446_v63 = vadd.f32 %v430_v55, %v346_v53  ;;  %v343_v62 = vadd.f32 %v327_v12, %v243_v42  ;;  %v566_v55 = vld [vmem:[%s1630_s2] sm:$0xff] }
  0xd9   :  { %v388_v1 = vpop.permute.xlu0 %387  ;;  %1087 = vset.pattern.permute.xlu1 %v1123_v3  ;;  %v445_v56 = vadd.f32 %v429_v17, %v345_v16  ;;  %978 = vmatprep.mubr.f32.mxu0 %v566_v55 }
  0xda   :  { %v427_v6 = vmul.f32 %v1390_v61, %v388_v1  ;;  %v546_v30 = vadd.f32 %v530_v50, %v446_v63  ;;  %v392_v8 = vpop.permute.xlu1 %391  ;;  %56 = vperm.xlu1 %1087, %v22_v46  }
  0xdb   :  { %v428_v34 = vmul.f32 %v1390_v61, %v392_v8 }
  0xdc   :  { %v443_v10 = vadd.f32 %v427_v6, %v343_v62  ;;  %v562_v45 = vmax.f32 %v546_v30, 0.0 }
  0xdd   :  { %v376_v60 = vpop.permute.xlu0 %375 }
  0xde   :  { %952 = vmatprep.subr.mxu0 %v562_v45  ;;  %v543_v33 = vadd.f32 %v527_v4, %v443_v10  ;;  %1089 = vset.pattern.permute.xlu1 %v1124_v5 }
  0xdf   :  { %953 = vmatpush3.msra.mxu0 %v562_v45  ;;  %v496_v19 = vpop.permute.xlu1 %495  ;;  %255 = vperm.xlu1 %1089, %v1278_v23   ;;  %v328_v23 = vmul.f32 %v1383_v57, %v292_v38 }
  0xe0   :  { %v529_v54 = vmul.f32 %v1387_v59, %v496_v19  ;;  %v559_v38 = vmax.f32 %v543_v33, 0.0 }
  0xe1   :  { %v344_v39 = vadd.f32 %v328_v23, %v244_v26 }
  0xe2   :  { %v545_v25 = vadd.f32 %v529_v54, %v445_v56 }
  0xe3   :  { %1090 = vset.pattern.permute.xlu1 %v1125_v9  ;;  %v444_v47 = vadd.f32 %v428_v34, %v344_v39 }
  0xe4   :  { %v561_v28 = vmax.f32 %v545_v25, 0.0  ;;  %v197_v32 = vpop.permute.xlu1 %196  ;;  %359 = vperm.xlu1 %1090, %v1417_v49  }
  0xe6   :  { %954 = vmatprep.subr.mxu0 %v561_v28 }
  0xe7   :  { %955 = vmatpush3.msra.mxu0 %v561_v28 }
  0xe8   :  { %1091 = vset.pattern.permute.xlu1 %v1123_v3 }
  0xe9   :  { %v284_v29 = vpop.permute.xlu1 %283  ;;  %156 = vperm.xlu1 %1091, %v1361_v43  }
  0xea   :  { %v326_v1 = vmul.f32 %v1383_v57, %v284_v29  ;;  %v364_v29 = vpop.permute.xlu0 %363 }
  0xeb   :  { %v421_v55 = vmul.f32 %v1390_v61, %v364_v29 }
  0xed   :  { %1092 = vset.pattern.permute.xlu1 %v1124_v5 }
  0xee   :  { %v492_v12 = vpop.permute.xlu1 %491  ;;  %251 = vperm.xlu1 %1092, %v22_v46  }
  0xef   :  { %v528_v44 = vmul.f32 %v1387_v59, %v492_v12 }
  0xf1   :  { %v544_v41 = vadd.f32 %v528_v44, %v444_v47 }
  0xf2   :  { %1094 = vset.pattern.permute.xlu1 %v1122_v2 }
  0xf3   :  { %v560_v3 = vmax.f32 %v544_v41, 0.0  ;;  %v87_v51 = vpop.permute.xlu1 %86  ;;  %459 = vperm.xlu1 %1094, %v1417_v49   ;;  %v356_v41 = vpop.permute.xlu0 %355 }
  0xf4   :  { %v144_v42 = vmul.f32 %v1385_v58, %v87_v51 }
  0xf5   :  { %956 = vmatprep.subr.mxu0 %v560_v3 }
  0xf6   :  { %957 = vmatpush3.msra.mxu0 %v560_v3 }
  0xf7   :  { %1095 = vset.pattern.permute.xlu1 %v1125_v9  ;;  %958 = vmatprep.subr.mxu0 %v559_v38  ;;  %v324_v9 = vmul.f32 %v1383_v57, %v1372_v48 }
  0xf8   :  { %v280_v50 = vpop.permute.xlu1 %279  ;;  %351 = vperm.xlu1 %1095, %v22_v46   ;;  %959 = vmatpush3.msra.mxu0 %v559_v38 }
  0xf9   :  { %v325_v45 = vmul.f32 %v1383_v57, %v280_v50  ;;  %v321_v50 = vmul.f32 %v1383_v57, %v1375_v52 }
  0xfb   :  { %v341_v17 = vadd.f32 %v325_v45, %v1429_v11 }
  0xfc   :  { %1096 = vset.pattern.permute.xlu1 %v1122_v2 }
  0xfd   :  { %v384_v53 = vpop.permute.xlu1 %383  ;;  %451 = vperm.xlu1 %1096, %v22_v46   ;;  %v424_v46 = vmul.f32 %v1390_v61, %v376_v60 }
  0xfe   :  { %v426_v30 = vmul.f32 %v1390_v61, %v384_v53 }
 0x101   :  { %1097 = vset.pattern.permute.xlu1 %v1124_v5  ;;  %v524_v5 = vmul.f32 %v1387_v59, %v1343_v37 }
 0x102   :  { %v82_v49 = vpop.permute.xlu1 %81  ;;  %643 = vperm.xlu1 %1097, %v1162_v0   ;;  %v146_v0 = vmul.f32 %v1385_v58, %v1455_v40 }
 0x104   :  { %v242_v6 = vadd.f32 %v197_v32, %v146_v0 }
 0x106   :  { %v187_v63 = vpop.permute.xlu1 %186  ;;  %635 = vperm.xlu1 %1097, %v1232_v15   ;;  %v342_v7 = vadd.f32 %v326_v1, %v242_v6 }
 0x107   :  { %v240_v2 = vadd.f32 %v187_v63, %v144_v42 }
 0x108   :  { %v442_v8 = vadd.f32 %v426_v30, %v342_v7 }
 0x109   :  { %v340_v62 = vadd.f32 %v324_v9, %v240_v2  ;;  %v464_v9 = vpop.permute.xlu0 %463 }
 0x10a   :  { %631 = vperm.xlu1 %1097, %v1224_v14  }
 0x10b   :  { %v440_v48 = vadd.f32 %v424_v46, %v340_v62  ;;  %v380_v4 = vpop.permute.xlu1 %379  ;;  %v521_v46 = vmul.f32 %v1387_v59, %v464_v9 }
 0x10d   :  { %v540_v15 = vadd.f32 %v524_v5, %v440_v48 }
 0x10e   :  { %623 = vperm.xlu1 %1097, %v1246_v18   ;;  %v425_v18 = vmul.f32 %v1390_v61, %v380_v4 }
 0x10f   :  { %v556_v54 = vmax.f32 %v540_v15, 0.0 }
 0x110   :  { %v484_v21 = vpop.permute.xlu1 %483 }
 0x111   :  { %v526_v14 = vmul.f32 %v1387_v59, %v484_v21 }
 0x112   :  { %615 = vperm.xlu1 %1097, %v1305_v27   ;;  %v441_v27 = vadd.f32 %v425_v18, %v341_v17 }
 0x113   :  { %v542_v37 = vadd.f32 %v526_v14, %v442_v8  ;;  %v419_v8 = vmul.f32 %v1390_v61, %v356_v41  ;;  %v576_v41 = vld [vmem:[%s1630_s2 + $0x50] sm:$0xff] }
 0x115   :  { %v558_v10 = vmax.f32 %v542_v37, 0.0  ;;  %v182_v40 = vpop.permute.xlu1 %181 }
 0x116   :  { %607 = vperm.xlu1 %1097, %v1341_v36  }
 0x117   :  { %960 = vmatprep.subr.mxu0 %v558_v10 }
 0x118   :  { %961 = vmatpush3.msra.mxu0 %v558_v10 }
 0x11a   :  { %v272_v13 = vpop.permute.xlu1 %271  ;;  %599 = vperm.xlu1 %1097, %v1271_v22  }
 0x11b   :  { %v323_v32 = vmul.f32 %v1383_v57, %v272_v13 }
 0x11e   :  { %591 = vperm.xlu1 %1097, %v1441_v24   ;;  %v143_v24 = vmul.f32 %v1385_v58, %v82_v49 }
 0x11f   :  { %v480_v33 = vpop.permute.xlu1 %479 }
 0x120   :  { %v525_v16 = vmul.f32 %v1387_v59, %v480_v33  ;;  %v239_v26 = vadd.f32 %v182_v40, %v143_v24  ;;  %v456_v40 = vpop.permute.xlu0 %455 }
 0x121   :  { %v519_v33 = vmul.f32 %v1387_v59, %v456_v40 }
 0x122   :  { %v541_v19 = vadd.f32 %v525_v16, %v441_v27  ;;  %583 = vperm.xlu1 %1097, %v1361_v43   ;;  %v339_v43 = vadd.f32 %v323_v32, %v239_v26 }
 0x124   :  { %v557_v36 = vmax.f32 %v541_v19, 0.0  ;;  %v72_v56 = vpop.permute.xlu1 %71 }
 0x125   :  { %v141_v44 = vmul.f32 %v1385_v58, %v72_v56 }
 0x126   :  { %962 = vmatprep.subr.mxu0 %v557_v36 }
 0x127   :  { %963 = vmatpush3.msra.mxu0 %v557_v36 }
 0x128   :  { %964 = vmatprep.subr.mxu0 %v556_v54 }
 0x129   :  { %v268_v22 = vpop.permute.xlu1 %267  ;;  %965 = vmatpush3.msra.mxu0 %v556_v54 }
 0x12a   :  { %v322_v53 = vmul.f32 %v1383_v57, %v268_v22 }
 0x12c   :  { %v338_v63 = vadd.f32 %v322_v53, %v1436_v20  ;;  %v581_v53 = vld [vmem:[%s1630_s2 + $0x78] sm:$0xff] }
 0x12e   :  { %v372_v25 = vpop.permute.xlu1 %371 }
 0x12f   :  { %v423_v23 = vmul.f32 %v1390_v61, %v372_v25 }
 0x131   :  { %v439_v39 = vadd.f32 %v423_v23, %v339_v43 }
 0x133   :  { %v67_v28 = vpop.permute.xlu1 %66 }
 0x134   :  { %v140_v21 = vmul.f32 %v1385_v58, %v67_v28 }
 0x137   :  { %v172_v11 = vpop.permute.xlu1 %171 }
 0x138   :  { %v237_v38 = vadd.f32 %v172_v11, %v141_v44  ;;  %v575_v44 = vld [vmem:[%s1630_s2 + $0x48] sm:$0xff] }
 0x13a   :  { %v337_v49 = vadd.f32 %v321_v50, %v237_v38  ;;  %v579_v38 = vld [vmem:[%s1630_s2 + $0x68] sm:$0xff]  ;;  %v580_v50 = vld [vmem:[%s1630_s2 + $0x70] sm:$0xff] }
 0x13c   :  { %v368_v35 = vpop.permute.xlu1 %367  ;;  %v437_v2 = vadd.f32 %v421_v55, %v337_v49  ;;  %v1126_v55 = vmov 0.0  }
 0x13d   :  { %v422_v42 = vmul.f32 %v1390_v61, %v368_v35  ;;  %1002 = vmatprep.subr.mxu1 %v1126_v55  ;;  %1034 = vmatprep.mubr.msk.f32.mxu1 %vm1127_vm0, %v1126_v55 }
 0x13e   :  { %v537_v52 = vadd.f32 %v521_v46, %v437_v2 }
 0x13f   :  { %v438_v5 = vadd.f32 %v422_v42, %v338_v63 }
 0x140   :  { %v553_v6 = vmax.f32 %v537_v52, 0.0  ;;  %v640_v52 = vpop.permute.xlu0 %639 }
 0x141   :  { %v472_v34 = vpop.permute.xlu1 %471 }
 0x142   :  { %v523_v12 = vmul.f32 %v1387_v59, %v472_v34  ;;  %v571_v34 = vld [vmem:[%s1630_s2 + $0x28] sm:$0xff] }
 0x144   :  { %v539_v47 = vadd.f32 %v523_v12, %v439_v39  ;;  %v572_v39 = vld [vmem:[%s1630_s2 + $0x30] sm:$0xff]  ;;  %v573_v12 = vld [vmem:[%s1630_s2 + $0x38] sm:$0xff] }
 0x146   :  { %v555_v3 = vmax.f32 %v539_v47, 0.0  ;;  %v167_v51 = vpop.permute.xlu1 %166  ;;  %v574_v47 = vld [vmem:[%s1630_s2 + $0x40] sm:$0xff] }
 0x147   :  { %v236_v45 = vadd.f32 %v167_v51, %v140_v21  ;;  %v578_v51 = vld [vmem:[%s1630_s2 + $0x60] sm:$0xff] }
 0x148   :  { %966 = vmatprep.subr.mxu0 %v555_v3 }
 0x149   :  { %967 = vmatpush3.msra.mxu0 %v555_v3  ;;  %v577_v3 = vld [vmem:[%s1630_s2 + $0x58] sm:$0xff] }
 0x14b   :  { %v260_v60 = vpop.permute.xlu1 %259 }
 0x14c   :  { %v320_v14 = vmul.f32 %v1383_v57, %v260_v60 }
 0x14e   :  { %v336_v18 = vadd.f32 %v320_v14, %v236_v45 }
 0x150   :  { %v468_v62 = vpop.permute.xlu1 %467 }
 0x151   :  { %v522_v0 = vmul.f32 %v1387_v59, %v468_v62 }
 0x153   :  { %v538_v1 = vadd.f32 %v522_v0, %v438_v5 }
 0x155   :  { %v554_v48 = vmax.f32 %v538_v1, 0.0  ;;  %v57_v4 = vpop.permute.xlu1 %56 }
 0x156   :  { %v138_v54 = vmul.f32 %v1385_v58, %v57_v4  ;;  %v568_v58 = vld [vmem:[%s1630_s2 + $0x10] sm:$0xff] }
 0x157   :  { %968 = vmatprep.subr.mxu0 %v554_v48 }
 0x158   :  { %969 = vmatpush3.msra.mxu0 %v554_v48 }
 0x159   :  { %970 = vmatprep.subr.mxu0 %v553_v6 }
 0x15a   :  { %v256_v30 = vpop.permute.xlu1 %255  ;;  %971 = vmatpush3.msra.mxu0 %v553_v6 }
 0x15b   :  { %v319_v20 = vmul.f32 %v1383_v57, %v256_v30  ;;  %v628_v30 = vpop.permute.xlu0 %627 }
 0x15d   :  { %v335_v37 = vadd.f32 %v319_v20, %v1450_v31 }
 0x15f   :  { %v360_v15 = vpop.permute.xlu1 %359  ;;  %v435_v17 = vadd.f32 %v419_v8, %v335_v37  ;;  %v620_v8 = vpop.permute.xlu0 %619 }
 0x160   :  { %v420_v13 = vmul.f32 %v1390_v61, %v360_v15 }
 0x161   :  { %v535_v36 = vadd.f32 %v519_v33, %v435_v17 }
 0x162   :  { %v436_v16 = vadd.f32 %v420_v13, %v336_v18 }
 0x163   :  { %v551_v28 = vmax.f32 %v535_v36, 0.0 }
 0x164   :  { %v157_v7 = vpop.permute.xlu1 %156 }
 0x165   :  { %v234_v11 = vadd.f32 %v157_v7, %v138_v54 }
 0x169   :  { %v252_v10 = vpop.permute.xlu1 %251 }
 0x16a   :  { %v318_v22 = vmul.f32 %v1383_v57, %v252_v10  ;;  %v567_v57 = vld [vmem:[%s1630_s2 + $0x8] sm:$0xff] }
 0x16c   :  { %v334_v32 = vadd.f32 %v318_v22, %v234_v11 }
 0x16e   :  { %v460_v27 = vpop.permute.xlu1 %459 }
 0x16f   :  { %v520_v19 = vmul.f32 %v1387_v59, %v460_v27  ;;  %v612_v27 = vpop.permute.xlu0 %611 }
 0x171   :  { %v536_v56 = vadd.f32 %v520_v19, %v436_v16 }
 0x173   :  { %v552_v31 = vmax.f32 %v536_v56, 0.0  ;;  %v352_v25 = vpop.permute.xlu1 %351 }
 0x174   :  { %v418_v24 = vmul.f32 %v1390_v61, %v352_v25  ;;  %v569_v61 = vld [vmem:[%s1630_s2 + $0x18] sm:$0xff]  ;;  %v604_v25 = vpop.permute.xlu0 %603 }
 0x175   :  { %972 = vmatprep.subr.mxu0 %v552_v31 }
 0x176   :  { %973 = vmatpush3.msra.mxu0 %v552_v31  ;;  %v434_v26 = vadd.f32 %v418_v24, %v334_v32 }
 0x177   :  { %974 = vmatprep.subr.mxu0 %v551_v28 }
 0x178   :  { %v452_v35 = vpop.permute.xlu1 %451  ;;  %975 = vmatpush3.msra.mxu0 %v551_v28 }
 0x179   :  { %v518_v23 = vmul.f32 %v1387_v59, %v452_v35  ;;  %v570_v59 = vld [vmem:[%s1630_s2 + $0x20] sm:$0xff] }
 0x17b   :  { %v534_v43 = vadd.f32 %v518_v23, %v434_v26 }
 0x17d   :  { %v550_v29 = vmax.f32 %v534_v43, 0.0  ;;  %v644_v42 = vpop.permute.xlu1 %643  ;;  %v596_v43 = vpop.permute.xlu0 %595 }
 0x17f   :  { %976 = vmatprep.subr.mxu0 %v550_v29 }
 0x180   :  { %977 = vmatpush3.msra.mxu0 %v550_v29 }
 0x181   :  { %979 = vmatmul.mubr.f32.vlgmr.msra.gmra.mxu0 %v567_v57  ;;  %v636_v62 = vpop.permute.xlu1 %635 }
 0x182   :  { %981 = vmatprep.mubr.f32.mxu0 %v568_v58 }
 0x185   :  { %982 = vmatmul.mubr.f32.gmra.mxu0 %v569_v61  ;;  %v632_v48 = vpop.permute.xlu1 %631 }
 0x186   :  { %984 = vmatprep.mubr.f32.mxu0 %v570_v59 }
 0x189   :  { %985 = vmatmul.mubr.f32.gmra.mxu0 %v571_v34  ;;  %v624_v7 = vpop.permute.xlu1 %623 }
 0x18a   :  { %987 = vmatprep.mubr.f32.mxu0 %v572_v39 }
 0x18d   :  { %988 = vmatmul.mubr.f32.gmra.mxu0 %v573_v12  ;;  %v616_v10 = vpop.permute.xlu1 %615  ;;  %v588_v12 = vpop.permute.xlu0 %587 }
 0x18e   :  { %990 = vmatprep.mubr.f32.mxu0 %v574_v47 }
 0x191   :  { %991 = vmatmul.mubr.f32.gmra.mxu0 %v575_v44  ;;  %v608_v36 = vpop.permute.xlu1 %607 }
 0x192   :  { %993 = vmatprep.mubr.f32.mxu0 %v576_v41 }
 0x195   :  { %994 = vmatmul.mubr.f32.gmra.mxu0 %v577_v3  ;;  %v600_v24 = vpop.permute.xlu1 %599 }
 0x196   :  { %996 = vmatprep.mubr.f32.mxu0 %v578_v51 }
 0x199   :  { %997 = vmatmul.mubr.f32.gmra.mxu0 %v579_v38  ;;  %v592_v58 = vpop.permute.xlu1 %591 }
 0x19a   :  { %999 = vmatprep.mubr.f32.mxu0 %v580_v50 }
 0x19d   :  { %1000 = vmatmul.mubr.f32.gmra.mxu0 %v581_v53  ;;  %v584_v41 = vpop.permute.xlu1 %583 }
 0x241   :  { %v1595_v49 = vpop.f32.mrf.mxu0 }
 0x242   :  { %v718_v3 = vadd.f32 %v1595_v49, %v588_v12  ;;  %v807_v49 = vld [vmem:[%s1631_s3] sm:$0xff] }
 0x243   :  { %v1597_v60 = vpop.f32.mrf.mxu0 }
 0x244   :  { %v713_v38 = vadd.f32 %v1597_v60, %v584_v41  ;;  %v792_v53 = vmax.f32 %v718_v3, 0.0 }
 0x245   :  { %v1599_v9 = vpop.f32.mrf.mxu0 }
 0x246   :  { %v728_v34 = vadd.f32 %v1599_v9, %v596_v43  ;;  %v791_v9 = vmax.f32 %v713_v38, 0.0 }
 0x247   :  { %v1601_v63 = vpop.f32.mrf.mxu0 }
 0x248   :  { %v723_v47 = vadd.f32 %v1601_v63, %v592_v58  ;;  %v794_v51 = vmax.f32 %v728_v34, 0.0 }
 0x249   :  { %v986_v2 = vpop.f32.mrf.mxu0 }
 0x24a   :  { %v738_v29 = vadd.f32 %v986_v2, %v604_v25  ;;  %v793_v50 = vmax.f32 %v723_v47, 0.0 }
 0x24b   :  { %v732_v46 = vpop.f32.mrf.mxu0 }
 0x24c   :  { %v733_v61 = vadd.f32 %v732_v46, %v600_v24  ;;  %v796_v39 = vmax.f32 %v738_v29, 0.0 }
 0x24d   :  { %v989_v5 = vpop.f32.mrf.mxu0 }
 0x24e   :  { %v748_v32 = vadd.f32 %v989_v5, %v612_v27  ;;  %v795_v44 = vmax.f32 %v733_v61, 0.0 }
 0x24f   :  { %v742_v0 = vpop.f32.mrf.mxu0 }
 0x250   :  { %v743_v26 = vadd.f32 %v742_v0, %v608_v36  ;;  %v798_v57 = vmax.f32 %v748_v32, 0.0 }
 0x251   :  { %v992_v1 = vpop.f32.mrf.mxu0 }
 0x252   :  { %v758_v22 = vadd.f32 %v992_v1, %v620_v8  ;;  %v797_v59 = vmax.f32 %v743_v26, 0.0 }
 0x253   :  { %v752_v4 = vpop.f32.mrf.mxu0 }
 0x254   :  { %v753_v28 = vadd.f32 %v752_v4, %v616_v10  ;;  %v800_v35 = vmax.f32 %v758_v22, 0.0 }
 0x255   :  { %v995_v6 = vpop.f32.mrf.mxu0 }
 0x256   :  { %v768_v16 = vadd.f32 %v995_v6, %v628_v30  ;;  %v799_v23 = vmax.f32 %v753_v28, 0.0 }
 0x257   :  { %v762_v15 = vpop.f32.mrf.mxu0 }
 0x258   :  { %v763_v56 = vadd.f32 %v762_v15, %v624_v7  ;;  %v802_v31 = vmax.f32 %v768_v16, 0.0 }
 0x259   :  { %v998_v20 = vpop.f32.mrf.mxu0 }
 0x25a   :  { %v778_v45 = vadd.f32 %v998_v20, %v636_v62  ;;  %v801_v11 = vmax.f32 %v763_v56, 0.0 }
 0x25b   :  { %v772_v21 = vpop.f32.mrf.mxu0 }
 0x25c   :  { %v773_v17 = vadd.f32 %v772_v21, %v632_v48  ;;  %v804_v19 = vmax.f32 %v778_v45, 0.0 }
 0x25d   :  { %v1001_v14 = vpop.f32.mrf.mxu0 }
 0x25e   :  { %v788_v37 = vadd.f32 %v1001_v14, %v644_v42  ;;  %v803_v54 = vmax.f32 %v773_v17, 0.0  ;;  %v810_v42 = vpop.permute.xlu0 %809 }
 0x25f   :  { %v782_v40 = vpop.f32.mrf.mxu0 }
 0x260   :  { %v806_v13 = vmax.f32 %v788_v37, 0.0  ;;  %v783_v18 = vadd.f32 %v782_v40, %v640_v52 }
 0x262   :  { %v805_v33 = vmax.f32 %v783_v18, 0.0  ;;  %1003 = vmatpush3.msra.mxu1 %v806_v13 }
 0x263   :  { %1004 = vmatprep.subr.mxu1 %v1126_v55 }
 0x264   :  { %1005 = vmatpush3.msra.mxu1 %v805_v33 }
 0x265   :  { %1006 = vmatprep.subr.mxu1 %v1126_v55 }
 0x266   :  { %1007 = vmatpush3.msra.mxu1 %v804_v19 }
 0x267   :  { %1008 = vmatprep.subr.mxu1 %v1126_v55 }
 0x268   :  { %1009 = vmatpush3.msra.mxu1 %v803_v54 }
 0x269   :  { %1010 = vmatprep.subr.mxu1 %v1126_v55 }
 0x26a   :  { %1011 = vmatpush3.msra.mxu1 %v802_v31 }
 0x26b   :  { %1012 = vmatprep.subr.mxu1 %v1126_v55 }
 0x26c   :  { %1013 = vmatpush3.msra.mxu1 %v801_v11 }
 0x26d   :  { %1014 = vmatprep.subr.mxu1 %v1126_v55 }
 0x26e   :  { %1015 = vmatpush3.msra.mxu1 %v800_v35 }
 0x26f   :  { %1016 = vmatprep.subr.mxu1 %v1126_v55 }
 0x270   :  { %1017 = vmatpush3.msra.mxu1 %v799_v23 }
 0x271   :  { %1018 = vmatprep.subr.mxu1 %v1126_v55 }
 0x272   :  { %1019 = vmatpush3.msra.mxu1 %v798_v57 }
 0x273   :  { %1020 = vmatprep.subr.mxu1 %v1126_v55 }
 0x274   :  { %1021 = vmatpush3.msra.mxu1 %v797_v59 }
 0x275   :  { %1022 = vmatprep.subr.mxu1 %v1126_v55 }
 0x276   :  { %1023 = vmatpush3.msra.mxu1 %v796_v39 }
 0x277   :  { %1024 = vmatprep.subr.mxu1 %v1126_v55 }
 0x278   :  { %1025 = vmatpush3.msra.mxu1 %v795_v44 }
 0x279   :  { %1026 = vmatprep.subr.mxu1 %v1126_v55 }
 0x27a   :  { %1027 = vmatpush3.msra.mxu1 %v794_v51 }
 0x27b   :  { %1028 = vmatprep.subr.mxu1 %v1126_v55 }
 0x27c   :  { %1029 = vmatpush3.msra.mxu1 %v793_v50 }
 0x27d   :  { %1030 = vmatprep.subr.mxu1 %v1126_v55 }
 0x27e   :  { %1031 = vmatpush3.msra.mxu1 %v792_v53 }
 0x27f   :  { %1032 = vmatprep.subr.mxu1 %v1126_v55 }
 0x280   :  { %1033 = vmatpush3.msra.mxu1 %v791_v9 }
 0x281   :  { %1035 = vmatmul.mubr.f32.vlgmr.msra.gmra.mxu1 %v807_v49 }
 0x341   :  { %v878_v60 = vpop.f32.mrf.mxu1 }
 0x342   :  { %v879_v63 = vadd.f32 %v878_v60, %v810_v42 }
 0x343   :  { %v1036_v2 = vpop.f32.mrf.mxu1 }
 0x344   :  { %882 = vst [vmem:[#allocation2] sm:$0xff] %v879_v63 }
 0x345   :  { %1111 = shalt.err (!%p1108_p4)
}
 0x346   :  { %892 = dma.vmem_to_hbm [thread:$0]  %s890_s12, 128, %s1633_s5, [#allocation3]  }
 0x347   :  { %1120 = dma.done.wait [#allocation3], 128  }
 0x348   :  { %1121 = vsyncadd [#allocation3], 4294967168 }
 0x349   :  { %896 = vsyncpa [#allocation3], 1 }

</bundles_post_ra>
